<compile_context>
chip_gen: v7x
topology: tpu7x:2x2x1
jax: 0.10.0
libtpu: 0.0.40
codegen_flags: <defaults>
</compile_context>

<pallas_src>
import functools

import jax
import jax.numpy as jnp
import numpy as np
from jax.experimental import pallas as pl
from jax.experimental.pallas import tpu as pltpu


def _round_up(x, m):
    return ((x + m - 1) // m) * m


def _pick_tile_s(seq_len, max_tile=512):
    """Largest tile (multiple of 8, <= max_tile) dividing seq_len."""
    if seq_len <= max_tile:
        return seq_len
    for t in range(max_tile, 7, -1):
        if seq_len % t == 0 and t % 8 == 0:
            return t
    return seq_len  # fall back to a single whole-sequence tile


def _bert_embeddings_kernel(ids_ref, tts_ref,                    # (tile_s, 1) int32
                            word_ref, type_ref,                  # VMEM-resident tables
                            pos_ref,                             # (tile_s, H) position rows
                            gamma_ref, beta_ref,                 # (1, H)
                            out_ref,                             # (tile_s, H)
                            *, hidden, vocab_pad, type_pad):
    ids = ids_ref[...]                                           # (tile_s, 1)
    tts = tts_ref[...]                                           # (tile_s, 1)
    tile_s = ids.shape[0]

    # In-VMEM row gather via one-hot matmuls (MXU is otherwise idle).
    # HIGHEST precision keeps the 0/1-weighted select exact in f32.
    v_iota = jax.lax.broadcasted_iota(jnp.int32, (tile_s, vocab_pad), 1)
    one_hot_w = (ids == v_iota).astype(jnp.float32)              # (tile_s, Vp)
    w = jnp.dot(one_hot_w, word_ref[...],
                preferred_element_type=jnp.float32,
                precision=jax.lax.Precision.HIGHEST)             # (tile_s, H)

    t_iota = jax.lax.broadcasted_iota(jnp.int32, (tile_s, type_pad), 1)
    one_hot_t = (tts == t_iota).astype(jnp.float32)              # (tile_s, Tp)
    t = jnp.dot(one_hot_t, type_ref[...],
                preferred_element_type=jnp.float32,
                precision=jax.lax.Precision.HIGHEST)             # (tile_s, H)

    x = w + pos_ref[...] + t                                     # (tile_s, H) f32

    # BertLayerNorm over the hidden dim (eps = 1e-12).
    inv_h = 1.0 / float(hidden)
    u = jnp.sum(x, axis=-1, keepdims=True) * inv_h
    d = x - u
    var = jnp.sum(d * d, axis=-1, keepdims=True) * inv_h
    y = gamma_ref[...] * (d * jax.lax.rsqrt(var + 1e-12)) + beta_ref[...]

    # Dropout: identity at inference.
    # TODO(synk): training-mode dropout via pltpu.prng_seed + stateful_bernoulli.
    out_ref[...] = y.astype(out_ref.dtype)


def prepare_embedding_params(word_emb, pos_emb, type_emb, gamma, beta):
    """One-time parameter preparation (hoisted out of the per-call path)."""
    V, H = word_emb.shape
    T = type_emb.shape[0]
    Vp = _round_up(max(V, 1), 128)
    Tp = _round_up(max(T, 1), 128)
    word_p = jnp.zeros((Vp, H), jnp.float32).at[:V].set(word_emb.astype(jnp.float32))
    type_p = jnp.zeros((Tp, H), jnp.float32).at[:T].set(type_emb.astype(jnp.float32))
    pos_p = pos_emb.astype(jnp.float32)
    gamma_p = gamma.reshape(1, H).astype(jnp.float32)
    beta_p = beta.reshape(1, H).astype(jnp.float32)
    return dict(word=word_p, type=type_p, pos=pos_p, gamma=gamma_p, beta=beta_p,
                vocab_size=V, type_vocab_size=T)


def bert_embeddings(input_ids, token_type_ids, params, *, tile_s=None):
    B, S = input_ids.shape
    word_p = params["word"]
    type_p = params["type"]
    pos_p = params["pos"]
    gamma_p = params["gamma"]
    beta_p = params["beta"]
    V = params["vocab_size"]
    T = params["type_vocab_size"]
    Vp, H = word_p.shape
    Tp = type_p.shape[0]
    P = pos_p.shape[0]
    assert S <= P, "seq_len must be <= max_position_embeddings"

    if token_type_ids is None:
        token_type_ids = jnp.zeros_like(input_ids)

    if tile_s is None:
        tile_s = _pick_tile_s(S)
    assert S % tile_s == 0, "tile_s must divide seq_len"
    num_s = S // tile_s

    # VMEM-resident tables (RNABERT-scale).  See TODO(synk) above for the
    # large-vocab HBM row-gather path.
    table_bytes = (Vp + Tp) * H * 4
    assert table_bytes <= 16 * 1024 * 1024, (
        "vocab/type tables too large for the VMEM-resident path")

    # Clamp ids so the one-hot gather never selects a padded/OOB row.
    ids3 = jnp.clip(input_ids, 0, V - 1).astype(jnp.int32)[..., None]        # (B,S,1)
    tts3 = jnp.clip(token_type_ids, 0, T - 1).astype(jnp.int32)[..., None]   # (B,S,1)

    pos_used = pos_p[:S]                                                     # (S, H)

    kernel = functools.partial(_bert_embeddings_kernel,
                               hidden=H, vocab_pad=Vp, type_pad=Tp)

    # Scoped-VMEM budget: resident tables (double-buffered) + streamed
    # pos/out blocks + headroom.  Capped at 48 MiB so it stays safe on v7x
    # (64 MiB physical VMEM per TensorCore).
    stream_bytes = 4 * tile_s * H * 4
    vmem_limit = int(min(48 * 1024 * 1024,
                         max(16 * 1024 * 1024,
                             2 * table_bytes + 2 * stream_bytes + (2 << 20))))

    out = pl.pallas_call(
        kernel,
        out_shape=jax.ShapeDtypeStruct((B, S, H), jnp.float32),
        grid_spec=pltpu.PrefetchScalarGridSpec(
            num_scalar_prefetch=0,
            grid=(num_s, B),                        # batch innermost: pos block reused
            in_specs=[
                pl.BlockSpec((None, tile_s, 1), lambda s, b: (b, s, 0)),  # input ids
                pl.BlockSpec((None, tile_s, 1), lambda s, b: (b, s, 0)),  # token type ids
                pl.BlockSpec((Vp, H), lambda s, b: (0, 0)),               # word table (VMEM)
                pl.BlockSpec((Tp, H), lambda s, b: (0, 0)),               # type table (VMEM)
                pl.BlockSpec((tile_s, H), lambda s, b: (s, 0)),           # position rows
                pl.BlockSpec((1, H), lambda s, b: (0, 0)),                # gamma
                pl.BlockSpec((1, H), lambda s, b: (0, 0)),                # beta
            ],
            out_specs=pl.BlockSpec((None, tile_s, H), lambda s, b: (b, s, 0)),
        ),
        compiler_params=pltpu.CompilerParams(
            dimension_semantics=("parallel", "parallel"),
            vmem_limit_bytes=vmem_limit,
        ),
    )(ids3, tts3, word_p, type_p, pos_used, gamma_p, beta_p)
    return out


def reference(input_ids, token_type_ids, word_emb, pos_emb, type_emb, gamma, beta):
    if token_type_ids is None:
        token_type_ids = jnp.zeros_like(input_ids)
    S = input_ids.shape[1]
    w = word_emb[input_ids]
    t = type_emb[token_type_ids]
    p = pos_emb[jnp.arange(S)][None, :, :]
    x = w + p + t
    u = jnp.mean(x, axis=-1, keepdims=True)
    s = jnp.mean((x - u) ** 2, axis=-1, keepdims=True)
    xn = (x - u) / jnp.sqrt(s + 1e-12)
    return gamma * xn + beta


def _run_case(key, B, S, H, VOCAB, MAX_POS, TYPE_VOCAB, tile_s, use_type_ids):
    k_w, k_p, k_t, k_g, k_b, k_ids, k_tt = jax.random.split(key, 7)
    word_emb = 0.02 * jax.random.normal(k_w, (VOCAB, H), jnp.float32)
    word_emb = word_emb.at[0].set(0.0)                    # padding_idx=0 row
    pos_emb = 0.02 * jax.random.normal(k_p, (MAX_POS, H), jnp.float32)
    type_emb = 0.02 * jax.random.normal(k_t, (TYPE_VOCAB, H), jnp.float32)
    gamma = 1.0 + 0.1 * jax.random.normal(k_g, (H,), jnp.float32)
    beta = 0.1 * jax.random.normal(k_b, (H,), jnp.float32)
    input_ids = jax.random.randint(k_ids, (B, S), 0, VOCAB, dtype=jnp.int32)
    token_type_ids = (jax.random.randint(k_tt, (B, S), 0, TYPE_VOCAB, dtype=jnp.int32)
                      if use_type_ids else None)

    params = prepare_embedding_params(word_emb, pos_emb, type_emb, gamma, beta)
    out = bert_embeddings(input_ids, token_type_ids, params, tile_s=tile_s)
    out = jax.block_until_ready(out)

    ref = reference(input_ids, token_type_ids, word_emb, pos_emb, type_emb, gamma, beta)
    np.testing.assert_allclose(np.asarray(out), np.asarray(ref),
                               rtol=2e-5, atol=2e-5)


if __name__ == "__main__":
    key0, key1 = jax.random.split(jax.random.PRNGKey(0), 2)
    # Lane-aligned hidden (H=128), multi-tile sequence -> grid (2, 2).
    _run_case(key0, B=2, S=16, H=128, VOCAB=16, MAX_POS=16, TYPE_VOCAB=2,
              tile_s=8, use_type_ids=True)
    # RNABERT-like hidden (H=120, not a lane multiple) + default token_type_ids.
    _run_case(key1, B=2, S=8, H=120, VOCAB=8, MAX_POS=16, TYPE_VOCAB=2,
              tile_s=None, use_type_ids=False)
    print("KERNEL_OK")
</pallas_src>

<mosaic_0001>
module attributes {stable_mosaic.version = 11 : i64} {
  func.func @_bert_embeddings_kernel(%arg0: i32, %arg1: i32, %arg2: memref<1x8x1xi32, #tpu.memory_space<vmem>>, %arg3: memref<1x8x1xi32, #tpu.memory_space<vmem>>, %arg4: memref<128x128xf32, #tpu.memory_space<vmem>>, %arg5: memref<128x128xf32, #tpu.memory_space<vmem>>, %arg6: memref<8x128xf32, #tpu.memory_space<vmem>>, %arg7: memref<1x128xf32, #tpu.memory_space<vmem>>, %arg8: memref<1x128xf32, #tpu.memory_space<vmem>>, %arg9: memref<1x8x128xf32, #tpu.memory_space<vmem>>) attributes {dimension_semantics = [#tpu.dimension_semantics<parallel>, #tpu.dimension_semantics<parallel>], iteration_bounds = array<i64: 2, 2>, scalar_prefetch = 0 : i64, scratch_operands = 0 : i64, tpu.core_type = #tpu.core_type<tc>, window_params = [{transform_indices = @transform_0, window_bounds = array<i64: 1, 8, 1>}, {transform_indices = @transform_1, window_bounds = array<i64: 1, 8, 1>}, {pipeline_mode = #tpu.pipeline_mode<synchronous>, transform_indices = @transform_2, window_bounds = array<i64: 128, 128>}, {pipeline_mode = #tpu.pipeline_mode<synchronous>, transform_indices = @transform_3, window_bounds = array<i64: 128, 128>}, {transform_indices = @transform_4, window_bounds = array<i64: 8, 128>}, {pipeline_mode = #tpu.pipeline_mode<synchronous>, transform_indices = @transform_5, window_bounds = array<i64: 1, 128>}, {pipeline_mode = #tpu.pipeline_mode<synchronous>, transform_indices = @transform_6, window_bounds = array<i64: 1, 128>}, {transform_indices = @transform_7, window_bounds = array<i64: 1, 8, 128>}]} {
    %c0 = arith.constant 0 : index
    %c0_0 = arith.constant 0 : index
    %c0_1 = arith.constant 0 : index
    %0 = vector.load %arg2[%c0, %c0_0, %c0_1] : memref<1x8x1xi32, #tpu.memory_space<vmem>>, vector<1x8x1xi32>
    %1 = vector.shape_cast %0 : vector<1x8x1xi32> to vector<8x1xi32>
    %c0_2 = arith.constant 0 : index
    %c0_3 = arith.constant 0 : index
    %c0_4 = arith.constant 0 : index
    %2 = vector.load %arg3[%c0_2, %c0_3, %c0_4] : memref<1x8x1xi32, #tpu.memory_space<vmem>>, vector<1x8x1xi32>
    %3 = vector.shape_cast %2 : vector<1x8x1xi32> to vector<8x1xi32>
    %4 = tpu.iota {dimensions = array<i32: 1>} : vector<8x128xi32>
    %5 = vector.broadcast %1 : vector<8x1xi32> to vector<8x128xi32>
    %6 = arith.cmpi eq, %5, %4 : vector<8x128xi32>
    %7 = arith.extui %6 : vector<8x128xi1> to vector<8x128xi32>
    %8 = arith.sitofp %7 : vector<8x128xi32> to vector<8x128xf32>
    %c0_5 = arith.constant 0 : index
    %c0_6 = arith.constant 0 : index
    %9 = vector.load %arg4[%c0_5, %c0_6] : memref<128x128xf32, #tpu.memory_space<vmem>>, vector<128x128xf32>
    %cst = arith.constant dense<0.000000e+00> : vector<8x128xf32>
    %10 = tpu.matmul %8, %9, %cst {dimension_numbers = #tpu.dot_dimension_numbers<[1], [0], [0], [1], [0, 0, 1, 1], [], []>, precision = #tpu.contract_precision<fp32>} : vector<8x128xf32>, vector<128x128xf32>, vector<8x128xf32> -> vector<8x128xf32>
    %11 = tpu.iota {dimensions = array<i32: 1>} : vector<8x128xi32>
    %12 = vector.broadcast %3 : vector<8x1xi32> to vector<8x128xi32>
    %13 = arith.cmpi eq, %12, %11 : vector<8x128xi32>
    %14 = arith.extui %13 : vector<8x128xi1> to vector<8x128xi32>
    %15 = arith.sitofp %14 : vector<8x128xi32> to vector<8x128xf32>
    %c0_7 = arith.constant 0 : index
    %c0_8 = arith.constant 0 : index
    %16 = vector.load %arg5[%c0_7, %c0_8] : memref<128x128xf32, #tpu.memory_space<vmem>>, vector<128x128xf32>
    %cst_9 = arith.constant dense<0.000000e+00> : vector<8x128xf32>
    %17 = tpu.matmul %15, %16, %cst_9 {dimension_numbers = #tpu.dot_dimension_numbers<[1], [0], [0], [1], [0, 0, 1, 1], [], []>, precision = #tpu.contract_precision<fp32>} : vector<8x128xf32>, vector<128x128xf32>, vector<8x128xf32> -> vector<8x128xf32>
    %c0_10 = arith.constant 0 : index
    %c0_11 = arith.constant 0 : index
    %18 = vector.load %arg6[%c0_10, %c0_11] : memref<8x128xf32, #tpu.memory_space<vmem>>, vector<8x128xf32>
    %19 = arith.addf %10, %18 : vector<8x128xf32>
    %20 = arith.addf %19, %17 : vector<8x128xf32>
    %cst_12 = arith.constant dense<0.000000e+00> : vector<8xf32>
    %21 = vector.multi_reduction <add>, %20, %cst_12 [1] : vector<8x128xf32> to vector<8xf32>
    %22 = vector.shape_cast %21 : vector<8xf32> to vector<8x1xf32>
    %cst_13 = arith.constant 7.812500e-03 : f32
    %23 = vector.broadcast %cst_13 : f32 to vector<8x1xf32>
    %24 = arith.mulf %22, %23 : vector<8x1xf32>
    %25 = vector.broadcast %24 : vector<8x1xf32> to vector<8x128xf32>
    %26 = arith.subf %20, %25 : vector<8x128xf32>
    %27 = arith.mulf %26, %26 : vector<8x128xf32>
    %cst_14 = arith.constant dense<0.000000e+00> : vector<8xf32>
    %28 = vector.multi_reduction <add>, %27, %cst_14 [1] : vector<8x128xf32> to vector<8xf32>
    %29 = vector.shape_cast %28 : vector<8xf32> to vector<8x1xf32>
    %cst_15 = arith.constant 7.812500e-03 : f32
    %30 = vector.broadcast %cst_15 : f32 to vector<8x1xf32>
    %31 = arith.mulf %29, %30 : vector<8x1xf32>
    %c0_16 = arith.constant 0 : index
    %c0_17 = arith.constant 0 : index
    %32 = vector.load %arg7[%c0_16, %c0_17] : memref<1x128xf32, #tpu.memory_space<vmem>>, vector<1x128xf32>
    %cst_18 = arith.constant 9.99999996E-13 : f32
    %33 = vector.broadcast %cst_18 : f32 to vector<8x1xf32>
    %34 = arith.addf %31, %33 : vector<8x1xf32>
    %35 = math.rsqrt %34 : vector<8x1xf32>
    %36 = vector.broadcast %35 : vector<8x1xf32> to vector<8x128xf32>
    %37 = arith.mulf %26, %36 : vector<8x128xf32>
    %38 = vector.broadcast %32 : vector<1x128xf32> to vector<8x128xf32>
    %39 = arith.mulf %38, %37 : vector<8x128xf32>
    %c0_19 = arith.constant 0 : index
    %c0_20 = arith.constant 0 : index
    %40 = vector.load %arg8[%c0_19, %c0_20] : memref<1x128xf32, #tpu.memory_space<vmem>>, vector<1x128xf32>
    %41 = vector.broadcast %40 : vector<1x128xf32> to vector<8x128xf32>
    %42 = arith.addf %39, %41 : vector<8x128xf32>
    %c0_21 = arith.constant 0 : index
    %c0_22 = arith.constant 0 : index
    %c0_23 = arith.constant 0 : index
    %43 = vector.load %arg9[%c0_21, %c0_22, %c0_23] : memref<1x8x128xf32, #tpu.memory_space<vmem>>, vector<1x8x128xf32>
    %44 = vector.shape_cast %43 : vector<1x8x128xf32> to vector<8x128xf32>
    %45 = vector.shape_cast %42 : vector<8x128xf32> to vector<1x8x128xf32>
    tpu.vector_store %arg9[%c0_21, %c0_22, %c0_23], %45 {strides = array<i32>} : memref<1x8x128xf32, #tpu.memory_space<vmem>>, vector<1x8x128xf32>,
    return
  }
  func.func @transform_0(%arg0: i32, %arg1: i32) -> (i32, i32, i32) {
    %c0_i32 = arith.constant 0 : i32
    %c0_i32_0 = arith.constant 0 : i32
    return %arg1, %arg0, %c0_i32 : i32, i32, i32
  }
  func.func @transform_1(%arg0: i32, %arg1: i32) -> (i32, i32, i32) {
    %c0_i32 = arith.constant 0 : i32
    %c0_i32_0 = arith.constant 0 : i32
    return %arg1, %arg0, %c0_i32 : i32, i32, i32
  }
  func.func @transform_2(%arg0: i32, %arg1: i32) -> (i32, i32) {
    %c0_i32 = arith.constant 0 : i32
    %c0_i32_0 = arith.constant 0 : i32
    %c0_i32_1 = arith.constant 0 : i32
    return %c0_i32, %c0_i32_0 : i32, i32
  }
  func.func @transform_3(%arg0: i32, %arg1: i32) -> (i32, i32) {
    %c0_i32 = arith.constant 0 : i32
    %c0_i32_0 = arith.constant 0 : i32
    %c0_i32_1 = arith.constant 0 : i32
    return %c0_i32, %c0_i32_0 : i32, i32
  }
  func.func @transform_4(%arg0: i32, %arg1: i32) -> (i32, i32) {
    %c0_i32 = arith.constant 0 : i32
    %c0_i32_0 = arith.constant 0 : i32
    return %arg0, %c0_i32 : i32, i32
  }
  func.func @transform_5(%arg0: i32, %arg1: i32) -> (i32, i32) {
    %c0_i32 = arith.constant 0 : i32
    %c0_i32_0 = arith.constant 0 : i32
    %c0_i32_1 = arith.constant 0 : i32
    return %c0_i32, %c0_i32_0 : i32, i32
  }
  func.func @transform_6(%arg0: i32, %arg1: i32) -> (i32, i32) {
    %c0_i32 = arith.constant 0 : i32
    %c0_i32_0 = arith.constant 0 : i32
    %c0_i32_1 = arith.constant 0 : i32
    return %c0_i32, %c0_i32_0 : i32, i32
  }
  func.func @transform_7(%arg0: i32, %arg1: i32) -> (i32, i32, i32) {
    %c0_i32 = arith.constant 0 : i32
    %c0_i32_0 = arith.constant 0 : i32
    return %arg1, %arg0, %c0_i32 : i32, i32, i32
  }
}

</mosaic_0001>

<bundles_post_ra>
// kernel: tpu_custom_call.1
= control target key start
LH: loop header
LB: loop body
LE: loop exit
PB: predicated region body
PF: predicated region fallthrough
CT: control target
= control target key end

     0   :  { %12 = vsyncpa [#allocation3], 0  ;;  %s4024_s0 = inlined_call_operand.vmem [shape: s32[2,16,1], index: 0, kind: input, shape index: {}]   ;;  %s4025_s1 = inlined_call_operand.vmem [shape: s32[2,16,1], index: 1, kind: input, shape index: {}]   ;;  %s4026_s2 = inlined_call_operand.hbm [shape: f32[128,128], index: 2, kind: input, shape index: {}]   ;;  %s4027_s3 = inlined_call_operand.hbm [shape: f32[128,128], index: 3, kind: input, shape index: {}]   ;;  %s4028_s4 = inlined_call_operand.vmem [shape: f32[16,128], index: 4, kind: input, shape index: {}]   ;;  %s4029_s5 = inlined_call_operand.vmem [shape: f32[1,128], index: 5, kind: input, shape index: {}]   ;;  %s4030_s6 = inlined_call_operand.vmem [shape: f32[1,128], index: 6, kind: input, shape index: {}]   ;;  %s4031_s7 = inlined_call_operand.hbm [shape: f32[2,16,128], index: 7, kind: output, shape index: {}]  }
   0x1   :  { %13 = vsyncpa [#allocation6], 0 }
   0x2   :  { %14 = vsyncpa [#allocation4], 0 }
   0x3   :  { %16 = vsyncpa [#allocation4 + $0x1], 0  ;;  %s3162_s24 = smov 0   ;;  %s3164_s25 = smov 0  }
   0x4   :  { %s3166_s26 = smov 0   ;;  %s3168_s27 = smov 0  }
   0x5   :  { %s3170_s28 = smov 0   ;;  %s3172_s29 = smov 0  }
   0x6   :  { %s3174_s30 = smov 0   ;;  %s3176_s8 = smov 0  }
   0x7 LB: > { %4105 = sst [smem:[#allocation11_spill]] %s3090_s26  ;;  %s1886_s9 = sadd.s32 4294967295, %s3110_s8   ;;  %s3110_s8 = sphi %s3176_s8, %s22_s8   ;;  %s3106_s30 = sphi %s3174_s30, %s4205_s30   ;;  %s3102_s29 = sphi %s3172_s29, %s4204_s29   ;;  %s3098_s28 = sphi %s3170_s28, %s4203_s28   ;;  %s3094_s27 = sphi %s3168_s27, %s4202_s27   ;;  %s3090_s26 = sphi %s3166_s26, %s4201_s26   ;;  %s3086_s25 = sphi %s3164_s25, %s4207_s25   ;;  %s3082_s24 = sphi %s3162_s24, %s4206_s24  }
   0x8   : > { %4106 = sst [smem:[#allocation12_spill]] %s3102_s29  ;;  %s1887_s10 = sadd.s32 4294967294, %s3110_s8  }
   0x9   : > { %4107 = sst [smem:[#allocation13_spill]] %s3106_s30  ;;  %s31_s11 = sadd.s32 1, %s3102_s29 }
   0xa   : > { %s34_s12 = sadd.s32 1, %s3106_s30  ;;  %p32_p0 = scmp.ge.s32.totalorder %s31_s11, 2 }
   0xb   : > { %s209_s13 = sadd.s32 1, %s3090_s26  ;;  %p219_p1 = scmp.ne.s32.totalorder %s3090_s26, %s3086_s25 }
   0xc   : > { %p220_p2 = scmp.eq.s32.totalorder %s1886_s9, 3  ;;  %s4209_s11 = smov (%p32_p0, %s31_s11), 0 }
   0xd   : > { %4108 = sst [smem:[#allocation14_spill]] %s4209_s11  ;;  %s4211_s12 = smov (!%p32_p0, %s34_s12), %s3106_s30 }
   0xe   : > { %s204_s14 = ssub.s32 %s3102_s29, %s4209_s11  ;;  %p3214_p3 = por %p220_p2, %p219_p1 }
   0xf   : > { %p36_p4 = scmp.ge.s32.totalorder %s4211_s12, 2  ;;  %p225_p5 = scmp.ne.s32.totalorder %s3086_s25, %s3082_s24 }
  0x10   : > { %s4109_s15 = scalar_select %p3214_p3, 1, 0 }
  0x11   : > { %p226_p6 = scmp.eq.s32.totalorder %s1887_s10, 3  ;;  %p1888_p7 = scmp.ge.s32.totalorder %s3110_s8, 1 }
  0x12   : > { %s4213_s12 = smov (%p36_p4, %s4211_s12), 0  ;;  %p233_p9 = scmp.lt.s32.totalorder %s3110_s8, 5 }
  0x13   : > { %4110 = sst [smem:[#allocation15_spill]] %s4213_s12  ;;  %p3223_p8 = por %p226_p6, %p225_p5 }
  0x14   : > { %s205_s17 = ssub.s32 %s3106_s30, %s4213_s12  ;;  %p3230_p10 = pnand %p1888_p7, %p233_p9 }
  0x15   : > { %s4111_s16 = scalar_select %p3223_p8, 1, 0 }
  0x16   : > { %s206_s18 = sor.u32 %s205_s17, %s204_s14  ;;  %p3234_p12 = scmp.eq.s32.totalorder %s1886_s9, 0 }
  0x17   : > { %4112 = sst [smem:[#allocation16_spill]] %s4111_s16  ;;  %p207_p11 = scmp.eq.s32.totalorder %s206_s18, 0 }
  0x18   : > { %s4113_s19 = scalar_select %p3230_p10, 1, 0 }
  0x19   : > { %s4114_s20 = scalar_select %p3234_p12, 1, 0 }
  0x1a   : > { %p2860_p13 = pneg %p3230_p10  ;;  %s3112_s22 = smov [#allocation2]  }
  0x1b   : > { %s3241_s21 = scalar_select %p207_p11, %s3090_s26, %s209_s13  }
  0x1c   : > { %s245_s23 = sshll.u32 %s3112_s22, 4  ;;  %p3245_p0 = pnand %p3234_p12, %p2860_p13  ;;  %s246_s23 = int_to_ptr.vmem [resolvable:$true] %s245_s23 }
  0x1d   : > { %4115 = sst [smem:[#allocation17_spill]] %s3241_s21  ;;  %s2952_s17 = scalar_lea.hbm %s4026_s2, 2048 }
  0x1e   : > { %p2953_p1 = scmp.ne.s32.totalorder %s4026_s2, %s2952_s17  ;;  %p2954_p2 = pneg %p3245_p0 }
  0x1f   : > { %p2959_p6 = scmp.lt.u32.totalorder %s2952_s17, %s4026_s2 }
  0x20   : > { %p2955_p4 = pnand %p2954_p2, %p2953_p1 }
  0x22   : > { %p2956_p5 = pneg %p2955_p4 }
  0x24   : > { %p2961_p7 = pnand %p2959_p6, %p2956_p5 }
  0x26   : > { %2964 = shalt.err (!%p2961_p7)
}
  0x27   : > { %s2965_s11 = scalar_lea.vmem %s246_s23, 2048  ;;  %p2973_p8 = scmp.lt.s32.totalorder %s246_s23, %s246_s23 }
  0x28   : > { %p2966_p9 = scmp.ne.s32.totalorder %s246_s23, %s2965_s11  ;;  %p2974_p3 = scmp.lt.s32.totalorder %s2965_s11, %s2965_s11 }
  0x2a   : > { %p2968_p11 = pnand %p2966_p9, %p2954_p2  ;;  %p2975_p12 = por %p2974_p3, %p2973_p8 }
  0x2c   : > { %p2969_p13 = pneg %p2968_p11 }
  0x2e   : > { %p2976_p10 = pnand %p2975_p12, %p2969_p13 }
  0x30   : > { %2979 = shalt.err (!%p2976_p10)
}
  0x31   : > { %s3113_s12 = smov 128   ;;  %s3114_s14 = smov 8  }
  0x32   : > { %2863 = dma.hbm_to_vmem [thread:$0]  (!%p3245_p0), %s4026_s2, 2048, %s246_s23, [#allocation3], %s3113_s12, %s3113_s12, %s3114_s14  }
  0x33   : > { %s3115_s18 = smov [#allocation5]   ;;  %s2980_s29 = scalar_lea.hbm %s4027_s3, 2048 }
  0x34   : > { %s258_s13 = sshll.u32 %s3115_s18, 4  ;;  %p2981_p3 = scmp.ne.s32.totalorder %s4027_s3, %s2980_s29  ;;  %s259_s13 = int_to_ptr.vmem [resolvable:$true] %s258_s13 }
  0x35   : > { %p2987_p12 = scmp.lt.u32.totalorder %s2980_s29, %s4027_s3 }
  0x36   : > { %p2983_p8 = pnand %p2981_p3, %p2954_p2 }
  0x38   : > { %p2984_p10 = pneg %p2983_p8 }
  0x3a   : > { %p2989_p1 = pnand %p2987_p12, %p2984_p10 }
  0x3c   : > { %2992 = shalt.err (!%p2989_p1)
}
  0x3d   : > { %s2993_s23 = scalar_lea.vmem %s259_s13, 2048  ;;  %p3001_p7 = scmp.lt.s32.totalorder %s259_s13, %s259_s13 }
  0x3e   : > { %p2994_p4 = scmp.ne.s32.totalorder %s259_s13, %s2993_s23  ;;  %p3002_p9 = scmp.lt.s32.totalorder %s2993_s23, %s2993_s23 }
  0x40   : > { %p2996_p5 = pnand %p2994_p4, %p2954_p2  ;;  %p3003_p11 = por %p3002_p9, %p3001_p7 }
  0x42   : > { %p2997_p6 = pneg %p2996_p5 }
  0x44   : > { %p3004_p13 = pnand %p3003_p11, %p2997_p6 }
  0x46   : > { %3007 = shalt.err (!%p3004_p13)
}
  0x47   : > { %2866 = dma.hbm_to_vmem [thread:$0]  (!%p3245_p0), %s4027_s3, 2048, %s259_s13, [#allocation6], %s3113_s12, %s3113_s12, %s3114_s14  }
  0x48   : > { %p4117_p3 = scmp.ne.s32.totalorder %s4113_s19, 0 }
  0x4a   : > { %309 = sbr.rel (%p4117_p3) target bundleno = 936 (0x3a8), region = 48 }
  0x51   : > { %p4118_p8 = scmp.ne.s32.totalorder %s4114_s20, 0 }
  0x53   : > { %3069 = dma.done.wait (%p4118_p8), [#allocation3], 2048  }
  0x54   : > { %3071 = vsyncadd (%p4118_p8), [#allocation3], 4294965248 }
  0x55   : > { %3073 = dma.done.wait (%p4118_p8), [#allocation6], 2048  }
  0x56   : > { %3075 = vsyncadd (%p4118_p8), [#allocation6], 4294965248  ;;  %p360_p0 = scmp.lt.s32.totalorder %s3094_s27, 1  ;;  %p362_p2 = scmp.lt.s32.totalorder %s3098_s28, 1  ;;  %v3116_v0 = vmov 0   ;;  %v4055_v1 = vmov 0.0|0.0  }
  0x57   : > { %2949 = vset.pattern.permute.xlu0 %v3116_v0  ;;  %2540 = vmatprep.subr.bf16.mxu1 %v4055_v1  ;;  %v412_v2 = vld [vmem:[#allocation5] sm:$0xff]  ;;  %v413_v3 = vld [vmem:[#allocation5 + $0x8] sm:$0xff]  ;;  %v414_v4 = vld [vmem:[#allocation5 + $0x10] sm:$0xff]  ;;  %vm3118_vm0 = vmmov 0   ;;  %s357_s30 = sand.u32 1, %s3086_s25   ;;  %p4197_p12 = scmp.ne.s32.totalorder %s4109_s15, 0 }
  0x58   : > { %s361_s26 = scalar_select %p360_p0, %s3094_s27, 1  ;;  %2684 = vmatprep.subr.bf16.mxu0 %v4055_v1  ;;  %v429_v7 = vand.u32 4294901760, %v412_v2  ;;  %v432_v8 = vand.u32 4294901760, %v413_v3  ;;  %v415_v9 = vld [vmem:[#allocation5 + $0x18] sm:$0xff]  ;;  %v435_v10 = vand.u32 4294901760, %v414_v4  ;;  %v390_v12 = vld [vmem:[#allocation2] sm:$0xff] }
  0x59   : > { %s3307_s29 = scalar_select %p362_p2, %s3098_s28, 1  ;;  %v438_v11 = vand.u32 4294901760, %v415_v9  ;;  %v391_v13 = vld [vmem:[#allocation2 + $0x8] sm:$0xff]  ;;  %v416_v14 = vld [vmem:[#allocation5 + $0x20] sm:$0xff]  ;;  %v392_v20 = vld [vmem:[#allocation2 + $0x10] sm:$0xff]  ;;  %v1071_v24 = vand.u32 4294901760, %v390_v12 }
  0x5a   : > { %s1896_s16 = sshll.u32 %s361_s26, 1  ;;  %v3316_v15 = vpack.c.bf16 %v432_v8, %v429_v7  ;;  %v3318_v16 = vsub.f32 %v412_v2, %v429_v7  ;;  %v3320_v17 = vsub.f32 %v413_v3, %v432_v8  ;;  %v3322_v18 = vsub.f32 %v414_v4, %v435_v10  ;;  %v417_v19 = vld [vmem:[#allocation5 + $0x28] sm:$0xff]  ;;  %v393_v21 = vld [vmem:[#allocation2 + $0x18] sm:$0xff]  ;;  %v418_v26 = vld [vmem:[#allocation5 + $0x30] sm:$0xff]  ;;  %s1895_s21 = sshll.u32 %s357_s30, 3 }
  0x5b   : > { %s365_s19 = sadd.s32 %s1896_s16, %s3307_s29  ;;  %v3324_v22 = vpack.c.bf16 %v438_v11, %v435_v10  ;;  %v3326_v23 = vsub.f32 %v415_v9, %v438_v11  ;;  %v1074_v25 = vand.u32 4294901760, %v391_v13  ;;  %v441_v27 = vand.u32 4294901760, %v416_v14  ;;  %v419_v31 = vld [vmem:[#allocation5 + $0x38] sm:$0xff]  ;;  %v394_v32 = vld [vmem:[#allocation2 + $0x20] sm:$0xff]  ;;  %v395_v37 = vld [vmem:[#allocation2 + $0x28] sm:$0xff]  ;;  %s1900_s13 = sshll.u32 %s3307_s29, 3 }
  0x5c   : > { %s1897_s20 = sshll.u32 %s365_s19, 3  ;;  %2542 = vmatpush3.bf16.msra.mxu1 %v3316_v15  ;;  %v444_v28 = vand.u32 4294901760, %v417_v19  ;;  %v1077_v29 = vand.u32 4294901760, %v392_v20  ;;  %v1080_v30 = vand.u32 4294901760, %v393_v21  ;;  %v3332_v34 = vsub.f32 %v390_v12, %v1071_v24  ;;  %v420_v38 = vld [vmem:[#allocation5 + $0x40] sm:$0xff]  ;;  %v421_v39 = vld [vmem:[#allocation5 + $0x48] sm:$0xff]  ;;  %s379_s23 = scalar_lea.vmem %s4028_s4, %s1900_s13 }
  0x5d   : > { %s375_s14 = scalar_lea.vmem %s4025_s1, %s1897_s20  ;;  %s367_s18 = scalar_lea.vmem %s4024_s0, %s1897_s20  ;;  %2543 = vmatprep.subr.bf16.mxu1 %v4055_v1  ;;  %v3330_v33 = vpack.c.bf16 %v1074_v25, %v1071_v24  ;;  %v3334_v35 = vsub.f32 %v391_v13, %v1074_v25  ;;  %v447_v36 = vand.u32 4294901760, %v418_v26  ;;  %v3338_v41 = vsub.f32 %v416_v14, %v441_v27  ;;  %v396_v44 = vld [vmem:[#allocation2 + $0x30] sm:$0xff]  ;;  %v397_v45 = vld [vmem:[#allocation2 + $0x38] sm:$0xff]  ;;  %v398_v60 = vld [vmem:[#allocation2 + $0x40] sm:$0xff] }
  0x5e   : > { %v381_v5 = vld [vmem:[%s375_s14] sm:$0xff]  ;;  %v3336_v40 = vpack.c.bf16 %v444_v28, %v441_v27  ;;  %v3340_v42 = vsub.f32 %v417_v19, %v444_v28  ;;  %v3342_v43 = vpack.c.bf16 %v1080_v30, %v1077_v29  ;;  %v3345_v46 = vsub.f32 %v392_v20, %v1077_v29  ;;  %v422_v54 = vld [vmem:[#allocation5 + $0x50] sm:$0xff]  ;;  %v423_v59 = vld [vmem:[#allocation5 + $0x58] sm:$0xff]  ;;  %s1912_s26 = sshll.u32 %s3094_s27, 1  ;;  %s359_s14 = scalar_lea.vmem [#allocation7], %s1895_s21 }
  0x5f   : > { %v380_v6 = vld [vmem:[%s367_s18] sm:$0xff]  ;;  %407 = vperm.xlu0 %2949, %v381_v5   ;;  %4119 = vst [vmem:[#allocation18_spill] sm:$0xff] %v3330_v33  ;;  %2686 = vmatpush3.bf16.msra.mxu0 %v3330_v33  ;;  %v3347_v47 = vsub.f32 %v393_v21, %v1080_v30  ;;  %v450_v48 = vand.u32 4294901760, %v419_v31  ;;  %v3349_v49 = vsub.f32 %v418_v26, %v447_v36  ;;  %v1083_v50 = vand.u32 4294901760, %v394_v32  ;;  %v399_v61 = vld [vmem:[#allocation2 + $0x48] sm:$0xff]  ;;  %v400_v5 = vld [vmem:[#allocation2 + $0x50] sm:$0xff]  ;;  %s1752_s29 = sadd.s32 %s3098_s28, %s1912_s26 }
  0x60   : > { %4120 = vst [vmem:[#allocation19_spill] sm:$0xff] %v3336_v40  ;;  %4121 = vst [vmem:[#allocation20_spill] sm:$0xff] %v3342_v43  ;;  %2545 = vmatpush3.bf16.msra.mxu1 %v3324_v22  ;;  %2687 = vmatprep.subr.bf16.mxu0 %v4055_v1  ;;  %v1086_v51 = vand.u32 4294901760, %v395_v37  ;;  %v453_v52 = vand.u32 4294901760, %v420_v38  ;;  %v456_v53 = vand.u32 4294901760, %v421_v39  ;;  %v1089_v57 = vand.u32 4294901760, %v396_v44 }
  0x61   : > { %2546 = vmatprep.subr.bf16.mxu1 %v4055_v1  ;;  %v3354_v55 = vpack.c.bf16 %v450_v48, %v447_v36  ;;  %v3356_v56 = vsub.f32 %v419_v31, %v450_v48  ;;  %v1092_v58 = vand.u32 4294901760, %v397_v45  ;;  %v3360_v63 = vsub.f32 %v394_v32, %v1083_v50  ;;  %v424_v3 = vld [vmem:[#allocation5 + $0x60] sm:$0xff]  ;;  %v425_v4 = vld [vmem:[#allocation5 + $0x68] sm:$0xff]  ;;  %v401_v21 = vld [vmem:[#allocation2 + $0x58] sm:$0xff]  ;;  %s1913_s12 = sshll.u32 %s1752_s29, 7  ;;  %s1756_s9 = sshll.u32 %s359_s14, 4  ;;  %s3973_s9 = int_to_ptr.vmem [resolvable:$true] %s1756_s9 }
  0x62   : > { %v3358_v62 = vpack.c.bf16 %v1086_v51, %v1083_v50  ;;  %v3362_v0 = vsub.f32 %v395_v37, %v1086_v51  ;;  %v3364_v2 = vpack.c.bf16 %v456_v53, %v453_v52  ;;  %v3369_v7 = vsub.f32 %v421_v39, %v456_v53  ;;  %v426_v25 = vld [vmem:[#allocation5 + $0x70] sm:$0xff]  ;;  %v427_v30 = vld [vmem:[#allocation5 + $0x78] sm:$0xff]  ;;  %v402_v31 = vld [vmem:[#allocation2 + $0x60] sm:$0xff]  ;;  %s3971_s27 = scalar_lea.hbm %s4031_s7, %s1913_s12  ;;  %s1741_s28 = scalar_lea.sflag [#allocation4], %s357_s30 }
  0x63   : > { %385 = vperm.xlu0 %2949, %v380_v6   ;;  %4122 = vst [vmem:[#allocation21_spill] sm:$0xff] %v3354_v55  ;;  %2689 = vmatpush3.bf16.msra.mxu0 %v3342_v43  ;;  %v3367_v6 = vsub.f32 %v420_v38, %v453_v52  ;;  %v3371_v8 = vpack.c.bf16 %v1092_v58, %v1089_v57  ;;  %v459_v11 = vand.u32 4294901760, %v422_v54  ;;  %v462_v12 = vand.u32 4294901760, %v423_v59  ;;  %v403_v32 = vld [vmem:[#allocation2 + $0x68] sm:$0xff]  ;;  %s3008_s13 = scalar_lea.vmem %s3973_s9, 128  ;;  %s3121_s22 = smov [#allocation7]  }
  0x64   : > { %4123 = vst [vmem:[#allocation22_spill] sm:$0xff] %v3358_v62  ;;  %4124 = vst [vmem:[#allocation23_spill] sm:$0xff] %v3364_v2  ;;  %v3373_v9 = vsub.f32 %v396_v44, %v1089_v57  ;;  %2548 = vmatpush3.bf16.msra.mxu1 %v3336_v40  ;;  %2690 = vmatprep.subr.bf16.mxu0 %v4055_v1  ;;  %v3377_v10 = vsub.f32 %v397_v45, %v1092_v58  ;;  %v1095_v13 = vand.u32 4294901760, %v398_v60  ;;  %p3009_p10 = scmp.ne.s32.totalorder %s3973_s9, %s3008_s13  ;;  %s3012_s11 = sshll.u32 %s3121_s22, 4  ;;  %s3013_s11 = int_to_ptr.vmem [resolvable:$false] %s3012_s11 }
  0x65   : > { %4125 = vst [vmem:[#allocation24_spill] sm:$0xff] %v3371_v8  ;;  %2549 = vmatprep.subr.bf16.mxu1 %v4055_v1  ;;  %v1098_v14 = vand.u32 4294901760, %v399_v61  ;;  %v465_v19 = vand.u32 4294901760, %v424_v3  ;;  %v468_v20 = vand.u32 4294901760, %v425_v4  ;;  %v1101_v24 = vand.u32 4294901760, %v400_v5  ;;  %p3015_p5 = scmp.lt.s32.totalorder %s3973_s9, %s3013_s11 }
  0x66   : > { %v3380_v26 = vpack.c.bf16 %v462_v12, %v459_v11  ;;  %v3382_v27 = vsub.f32 %v422_v54, %v459_v11  ;;  %v3384_v28 = vsub.f32 %v423_v59, %v462_v12  ;;  %v3386_v29 = vsub.f32 %v398_v60, %v1095_v13  ;;  %v404_v54 = vld [vmem:[#allocation2 + $0x70] sm:$0xff]  ;;  %p3010_p1 = pnand %p3009_p10, %p4197_p12 }
  0x67   : > { %2692 = vmatpush3.bf16.msra.mxu0 %v3358_v62  ;;  %v3389_v36 = vpack.c.bf16 %v1098_v14, %v1095_v13  ;;  %v3391_v37 = vsub.f32 %v399_v61, %v1098_v14  ;;  %v3393_v38 = vpack.c.bf16 %v468_v20, %v465_v19  ;;  %v3395_v39 = vsub.f32 %v424_v3, %v465_v19  ;;  %v405_v3 = vld [vmem:[#allocation2 + $0x78] sm:$0xff] }
  0x68   : > { %4126 = vst [vmem:[#allocation25_spill] sm:$0xff] %v3380_v26  ;;  %2551 = vmatpush3.bf16.msra.mxu1 %v3354_v55  ;;  %2693 = vmatprep.subr.bf16.mxu0 %v4055_v1  ;;  %v3399_v44 = vsub.f32 %v425_v4, %v468_v20  ;;  %v1104_v45 = vand.u32 4294901760, %v401_v21  ;;  %v3401_v48 = vsub.f32 %v400_v5, %v1101_v24  ;;  %v471_v50 = vand.u32 4294901760, %v426_v25  ;;  %p3011_p4 = pneg %p3010_p1 }
  0x69   : > { %4127 = vst [vmem:[#allocation26_spill] sm:$0xff] %v3389_v36  ;;  %4128 = vst [vmem:[#allocation27_spill] sm:$0xff] %v3393_v38  ;;  %2552 = vmatprep.subr.bf16.mxu1 %v4055_v1  ;;  %v474_v51 = vand.u32 4294901760, %v427_v30  ;;  %v1107_v52 = vand.u32 4294901760, %v402_v31  ;;  %v1110_v53 = vand.u32 4294901760, %v403_v32  ;;  %v4046_v60 = vmov 0.0  }
  0x6a   : > { %v3404_v57 = vpack.c.bf16 %v1104_v45, %v1101_v24  ;;  %v3406_v58 = vsub.f32 %v401_v21, %v1104_v45  ;;  %v3408_v59 = vsub.f32 %v426_v25, %v471_v50  ;;  %2152 = vmatprep.mubr.msk.f32.mxu1 %vm3118_vm0, %v4046_v60  ;;  %v4045_v61 = vand.u32 4294901760, %v3318_v16  ;;  %2362 = vmatprep.mubr.msk.f32.mxu0 %vm3118_vm0, %v4046_v60 }
  0x6b   : > { %2695 = vmatpush3.bf16.msra.mxu0 %v3371_v8  ;;  %v3416_v4 = vpack.c.bf16 %v474_v51, %v471_v50  ;;  %v3418_v5 = vsub.f32 %v427_v30, %v474_v51  ;;  %v3420_v11 = vpack.c.bf16 %v1110_v53, %v1107_v52  ;;  %v3422_v12 = vsub.f32 %v402_v31, %v1107_v52 }
  0x6c   : > { %4129 = vst [vmem:[#allocation28_spill] sm:$0xff] %v3404_v57  ;;  %2554 = vmatpush3.bf16.msra.mxu1 %v3364_v2  ;;  %2696 = vmatprep.subr.bf16.mxu0 %v4055_v1  ;;  %v3426_v13 = vsub.f32 %v403_v32, %v1110_v53  ;;  %v523_v14 = vsub.f32 %v3318_v16, %v4045_v61  ;;  %v4043_v19 = vand.u32 4294901760, %v3320_v17  ;;  %v1113_v20 = vand.u32 4294901760, %v404_v54 }
  0x6d   : > { %4130 = vst [vmem:[#allocation29_spill] sm:$0xff] %v3416_v4  ;;  %4131 = vst [vmem:[#allocation30_spill] sm:$0xff] %v3420_v11  ;;  %2555 = vmatprep.subr.bf16.mxu1 %v4055_v1  ;;  %v1116_v21 = vand.u32 4294901760, %v405_v3  ;;  %v4042_v24 = vand.u32 4294901760, %v3322_v18  ;;  %v4044_v25 = vand.u32 4294901760, %v3326_v23  ;;  %v4050_v30 = vand.u32 4294901760, %v3332_v34 }
  0x6e   : > { %v524_v31 = vand.u32 4294901760, %v523_v14  ;;  %v530_v32 = vsub.f32 %v3320_v17, %v4043_v19  ;;  %v3439_v45 = vsub.f32 %v404_v54, %v1113_v20  ;;  %v4051_v50 = vand.u32 4294901760, %v3334_v35 }
  0x6f   : > { %2698 = vmatpush3.bf16.msra.mxu0 %v3389_v36  ;;  %v3443_v51 = vpack.c.bf16 %v1116_v21, %v1113_v20  ;;  %v3445_v52 = vsub.f32 %v405_v3, %v1116_v21  ;;  %v537_v53 = vsub.f32 %v3322_v18, %v4042_v24  ;;  %v544_v14 = vsub.f32 %v3326_v23, %v4044_v25 }
  0x70   : > { %2557 = vmatpush3.bf16.msra.mxu1 %v3380_v26  ;;  %2699 = vmatprep.subr.bf16.mxu0 %v4055_v1  ;;  %v531_v54 = vand.u32 4294901760, %v530_v32  ;;  %v1165_v20 = vsub.f32 %v3332_v34, %v4050_v30  ;;  %v1172_v3 = vsub.f32 %v3334_v35, %v4051_v50  ;;  %v4054_v21 = vand.u32 4294901760, %v3338_v41 }
  0x71   : > { %4132 = vst [vmem:[#allocation31_spill] sm:$0xff] %v3443_v51  ;;  %2558 = vmatprep.subr.bf16.mxu1 %v4055_v1  ;;  %v538_v24 = vand.u32 4294901760, %v537_v53  ;;  %v545_v19 = vand.u32 4294901760, %v544_v14  ;;  %v4052_v25 = vand.u32 4294901760, %v3340_v42  ;;  %v4053_v61 = vand.u32 4294901760, %v3345_v46 }
  0x72   : > { %v3465_v60 = vpack.c.bf16 %v531_v54, %v524_v31  ;;  %v1166_v32 = vand.u32 4294901760, %v1165_v20  ;;  %v1173_v36 = vand.u32 4294901760, %v1172_v3  ;;  %v551_v30 = vsub.f32 %v3338_v41, %v4054_v21 }
  0x73   : > { %2701 = vmatpush3.bf16.msra.mxu0 %v3404_v57  ;;  %v3471_v50 = vpack.c.bf16 %v545_v19, %v538_v24  ;;  %v558_v53 = vsub.f32 %v3340_v42, %v4052_v25  ;;  %v1179_v14 = vsub.f32 %v3345_v46, %v4053_v61  ;;  %v4057_v31 = vand.u32 4294901760, %v3347_v47 }
  0x74   : > { %2560 = vmatpush3.bf16.msra.mxu1 %v3393_v38  ;;  %2702 = vmatprep.subr.bf16.mxu0 %v4055_v1  ;;  %v3482_v54 = vpack.c.bf16 %v1173_v36, %v1166_v32  ;;  %v552_v20 = vand.u32 4294901760, %v551_v30  ;;  %v4060_v19 = vand.u32 4294901760, %v3349_v49  ;;  %v4061_v24 = vand.u32 4294901760, %v3356_v56 }
  0x75   : > { %2561 = vmatprep.subr.bf16.mxu1 %v4055_v1  ;;  %v559_v3 = vand.u32 4294901760, %v558_v53  ;;  %v1180_v25 = vand.u32 4294901760, %v1179_v14  ;;  %v1186_v61 = vsub.f32 %v3347_v47, %v4057_v31  ;;  %v4064_v21 = vand.u32 4294901760, %v3360_v63 }
  0x76   : > { %v565_v36 = vsub.f32 %v3349_v49, %v4060_v19  ;;  %v572_v30 = vsub.f32 %v3356_v56, %v4061_v24  ;;  %v4071_v32 = vand.u32 4294901760, %v3362_v0  ;;  %v4072_v57 = vand.u32 4294901760, %v3369_v7 }
  0x77   : > { %2704 = vmatpush3.bf16.msra.mxu0 %v3420_v11  ;;  %v3500_v53 = vpack.c.bf16 %v559_v3, %v552_v20  ;;  %v1187_v14 = vand.u32 4294901760, %v1186_v61  ;;  %v1193_v31 = vsub.f32 %v3360_v63, %v4064_v21  ;;  %v4133_v19 = vmov 0.0|0.0  }
  0x78   : > { %2563 = vmatpush3.bf16.msra.mxu1 %v3416_v4  ;;  %2705 = vmatprep.subr.bf16.mxu0 %v4133_v19  ;;  %v566_v24 = vand.u32 4294901760, %v565_v36  ;;  %v573_v38 = vand.u32 4294901760, %v572_v30  ;;  %v1200_v1 = vsub.f32 %v3362_v0, %v4071_v32  ;;  %v4134_v20 = vand.u32 4294901760, %v3367_v6 }
  0x79   : > { %2564 = vmatprep.subr.bf16.mxu1 %v4133_v19  ;;  %v3515_v3 = vpack.c.bf16 %v1187_v14, %v1180_v25  ;;  %v1194_v21 = vand.u32 4294901760, %v1193_v31  ;;  %v586_v11 = vsub.f32 %v3369_v7, %v4072_v57  ;;  %v4073_v36 = vand.u32 4294901760, %v3373_v9 }
  0x7a   : > { %v579_v61 = vsub.f32 %v3367_v6, %v4134_v20  ;;  %v3521_v30 = vpack.c.bf16 %v573_v38, %v566_v24  ;;  %v1201_v4 = vand.u32 4294901760, %v1200_v1  ;;  %v4074_v32 = vand.u32 4294901760, %v3377_v10 }
  0x7b   : > { %2707 = vmatpush3.bf16.msra.mxu0 %v3443_v51  ;;  %v587_v20 = vand.u32 4294901760, %v586_v11  ;;  %v1207_v25 = vsub.f32 %v3373_v9, %v4073_v36  ;;  %v4079_v31 = vand.u32 4294901760, %v3382_v27  ;;  %v4082_v14 = vand.u32 4294901760, %v3384_v28 }
  0x7c   : > { %v580_v26 = vand.u32 4294901760, %v579_v61  ;;  %2708 = vmatprep.subr.bf16.mxu0 %v4133_v19  ;;  %v3531_v57 = vpack.c.bf16 %v1201_v4, %v1194_v21  ;;  %v1214_v1 = vsub.f32 %v3377_v10, %v4074_v32  ;;  %v4083_v38 = vand.u32 4294901760, %v3386_v29 }
  0x7d   : > { %v4086_v11 = vand.u32 4294901760, %v3391_v37  ;;  %v1208_v61 = vand.u32 4294901760, %v1207_v25  ;;  %v593_v36 = vsub.f32 %v3382_v27, %v4079_v31  ;;  %v600_v4 = vsub.f32 %v3384_v28, %v4082_v14 }
  0x7e   : > { %v3538_v24 = vpack.c.bf16 %v587_v20, %v580_v26  ;;  %v1215_v21 = vand.u32 4294901760, %v1214_v1  ;;  %v1221_v32 = vsub.f32 %v3386_v29, %v4083_v38  ;;  %v4087_v26 = vand.u32 4294901760, %v3395_v39 }
  0x7f   : > { %v1228_v51 = vsub.f32 %v3391_v37, %v4086_v11  ;;  %v594_v20 = vand.u32 4294901760, %v593_v36  ;;  %v601_v25 = vand.u32 4294901760, %v600_v4  ;;  %v4088_v8 = vand.u32 4294901760, %v3399_v44 }
  0x80   : > { %v4089_v31 = vand.u32 4294901760, %v3401_v48  ;;  %v3555_v2 = vpack.c.bf16 %v1215_v21, %v1208_v61  ;;  %v1222_v14 = vand.u32 4294901760, %v1221_v32  ;;  %v607_v38 = vsub.f32 %v3395_v39, %v4087_v26 }
  0x81   : > { %v1229_v1 = vand.u32 4294901760, %v1228_v51  ;;  %v3560_v62 = vpack.c.bf16 %v601_v25, %v594_v20  ;;  %v614_v11 = vsub.f32 %v3399_v44, %v4088_v8  ;;  %v4090_v4 = vand.u32 4294901760, %v3406_v58 }
  0x82   : > { %v1235_v36 = vsub.f32 %v3401_v48, %v4089_v31  ;;  %v608_v32 = vand.u32 4294901760, %v607_v38  ;;  %v4095_v51 = vand.u32 4294901760, %v3408_v59  ;;  %v4096_v21 = vand.u32 4294901760, %v3418_v5 }
  0x83   : > { %v3569_v61 = vpack.c.bf16 %v1229_v1, %v1222_v14  ;;  %v615_v26 = vand.u32 4294901760, %v614_v11  ;;  %v1242_v25 = vsub.f32 %v3406_v58, %v4090_v4  ;;  %v4099_v8 = vand.u32 4294901760, %v3422_v12 }
  0x84   : > { %v1236_v20 = vand.u32 4294901760, %v1235_v36  ;;  %v621_v31 = vsub.f32 %v3408_v59, %v4095_v51  ;;  %v628_v14 = vsub.f32 %v3418_v5, %v4096_v21  ;;  %v4102_v38 = vand.u32 4294901760, %v3426_v13 }
  0x85   : > { %v3584_v1 = vpack.c.bf16 %v615_v26, %v608_v32  ;;  %v1243_v11 = vand.u32 4294901760, %v1242_v25  ;;  %v1249_v36 = vsub.f32 %v3422_v12, %v4099_v8  ;;  %v2589_v4 = vpack.c.bf16 %v3320_v17, %v3318_v16 }
  0x86   : > { %v622_v55 = vand.u32 4294901760, %v621_v31  ;;  %v629_v43 = vand.u32 4294901760, %v628_v14  ;;  %v1256_v51 = vsub.f32 %v3426_v13, %v4102_v38  ;;  %v4103_v21 = vand.u32 4294901760, %v3439_v45 }
  0x87   : > { %v3595_v40 = vpack.c.bf16 %v1243_v11, %v1236_v20  ;;  %v1250_v26 = vand.u32 4294901760, %v1249_v36  ;;  %v4104_v32 = vand.u32 4294901760, %v3445_v52 }
  0x88   : > { %v3600_v8 = vpack.c.bf16 %v629_v43, %v622_v55  ;;  %v1257_v33 = vand.u32 4294901760, %v1256_v51  ;;  %v1263_v31 = vsub.f32 %v3439_v45, %v4103_v21 }
  0x89   : > { %v1270_v20 = vsub.f32 %v3445_v52, %v4104_v32  ;;  %v382_v32 = vlaneseq }
  0x8a   : > { %v2727_v36 = vpack.c.bf16 %v1257_v33, %v1250_v26  ;;  %v1264_v38 = vand.u32 4294901760, %v1263_v31 }
  0x8b   : > { %v1271_v55 = vand.u32 4294901760, %v1270_v20  ;;  %v3638_v33 = vand.u32 127, %v382_v32 }
  0x8d   : > { %v3614_v51 = vpack.c.bf16 %v1271_v55, %v1264_v38  ;;  %v4135_v38 = vmov 0.0  }
  0xde   : > { %v3640_v14 = vpop.permute.xlu0 %407 }
  0xdf   : > { %vm409_vm1 = vcmp.eq.s32.totalorder %v3640_v14, %v3638_v33 }
  0xe0   : > { %v1902_v31 = vsel %vm409_vm1, 1.0, %v4135_v38 }
  0xe1   : > { %v3648_v20 = vsub.f32 %v1902_v31, %v1902_v31 }
  0xe2   : > { %v3650_v26 = vpop.permute.xlu0 %385 }
  0xe3   : > { %vm387_vm2 = vcmp.eq.s32.totalorder %v3650_v26, %v3638_v33  ;;  %v511_v32 = vand.u32 4294901760, %v3648_v20 }
  0xe4   : > { %v1901_v11 = vsel %vm387_vm2, 1.0, %v4135_v38 }
  0xe5   : > { %v3659_v55 = vsub.f32 %v1901_v11, %v1901_v11  ;;  %v512_v21 = vsub.f32 %v3648_v20, %v511_v32 }
  0xe7   : > { %v513_v31 = vand.u32 4294901760, %v512_v21  ;;  %v1153_v43 = vand.u32 4294901760, %v3659_v55  ;;  %v4149_v21 = vpack.c.bf16 %v3426_v13, %v3422_v12 }
  0xe9   : > { %2153 = vmatmul.mubr.f32.vlgmr.msra.gmra.mrb[0].mxu1 %v513_v31  ;;  %v1154_v25 = vsub.f32 %v3659_v55, %v1153_v43  ;;  %v4154_v31 = vld [vmem:[#allocation21_spill] sm:$0xff] }
  0xea   : > { %2566 = vmatpush3.bf16.msra.mxu1 %v3465_v60  ;;  %2187 = vmatprep.mubr.msk.f32.mxu1 %vm3118_vm0, %v4135_v38  ;;  %v4140_v60 = vpack.c.bf16 %v3356_v56, %v3349_v49 }
  0xeb   : > { %2567 = vmatprep.subr.bf16.mxu1 %v4133_v19  ;;  %v1155_v11 = vand.u32 4294901760, %v1154_v25  ;;  %v4151_v25 = vld [vmem:[#allocation18_spill] sm:$0xff] }
  0xed   : > { %2363 = vmatmul.mubr.f32.vlgmr.msra.gmra.mrb[0].mxu0 %v1155_v11  ;;  %v4155_v11 = vld [vmem:[#allocation22_spill] sm:$0xff] }
  0xee   : > { %2569 = vmatpush3.bf16.msra.mxu1 %v3471_v50  ;;  %2710 = vmatpush3.bf16.msra.mxu0 %v3482_v54  ;;  %v4141_v50 = vpack.c.bf16 %v3362_v0, %v3360_v63  ;;  %v4142_v54 = vpack.c.bf16 %v3369_v7, %v3367_v6 }
  0xef   : > { %2570 = vmatprep.subr.bf16.mxu1 %v4133_v19  ;;  %2711 = vmatprep.subr.bf16.mxu0 %v4133_v19 }
  0xf0   : > { %2397 = vmatprep.mubr.msk.f32.mxu0 %vm3118_vm0, %v4135_v38 }
  0xf2   : > { %2572 = vmatpush3.bf16.msra.mxu1 %v3500_v53  ;;  %2713 = vmatpush3.bf16.msra.mxu0 %v3515_v3  ;;  %v4143_v53 = vpack.c.bf16 %v3377_v10, %v3373_v9  ;;  %v4144_v3 = vpack.c.bf16 %v3384_v28, %v3382_v27 }
  0xf3   : > { %2573 = vmatprep.subr.bf16.mxu1 %v4133_v19  ;;  %2714 = vmatprep.subr.bf16.mxu0 %v4133_v19 }
  0xf6   : > { %2575 = vmatpush3.bf16.msra.mxu1 %v3521_v30  ;;  %2716 = vmatpush3.bf16.msra.mxu0 %v3531_v57  ;;  %v4139_v57 = vpack.c.bf16 %v3347_v47, %v3345_v46  ;;  %v4145_v30 = vpack.c.bf16 %v3391_v37, %v3386_v29 }
  0xf7   : > { %2576 = vmatprep.subr.bf16.mxu1 %v4133_v19  ;;  %2717 = vmatprep.subr.bf16.mxu0 %v4133_v19 }
  0xfa   : > { %2578 = vmatpush3.bf16.msra.mxu1 %v3538_v24  ;;  %2719 = vmatpush3.bf16.msra.mxu0 %v3555_v2  ;;  %v4137_v2 = vpack.c.bf16 %v3334_v35, %v3332_v34  ;;  %v4146_v24 = vpack.c.bf16 %v3399_v44, %v3395_v39 }
  0xfb   : > { %2579 = vmatprep.subr.bf16.mxu1 %v4133_v19  ;;  %2720 = vmatprep.subr.bf16.mxu0 %v4133_v19 }
  0xfe   : > { %2581 = vmatpush3.bf16.msra.mxu1 %v3560_v62  ;;  %2722 = vmatpush3.bf16.msra.mxu0 %v3569_v61  ;;  %v3120_v62 = vmov 1.0   ;;  %v4148_v61 = vpack.c.bf16 %v3418_v5, %v3408_v59 }
  0xff   : > { %2582 = vmatprep.subr.bf16.mxu1 %v4133_v19  ;;  %2723 = vmatprep.subr.bf16.mxu0 %v4133_v19 }
 0x102   : > { %2584 = vmatpush3.bf16.msra.mxu1 %v3584_v1  ;;  %2725 = vmatpush3.bf16.msra.mxu0 %v3595_v40  ;;  %v4136_v40 = vpack.c.bf16 %v3326_v23, %v3322_v18  ;;  %v4150_v1 = vpack.c.bf16 %v3445_v52, %v3439_v45 }
 0x103   : > { %2585 = vmatprep.subr.bf16.mxu1 %v4133_v19  ;;  %2726 = vmatprep.subr.bf16.mxu0 %v4133_v19 }
 0x106   : > { %2587 = vmatpush3.bf16.msra.mxu1 %v3600_v8  ;;  %2728 = vmatpush3.bf16.msra.mxu0 %v2727_v36  ;;  %v4138_v8 = vpack.c.bf16 %v3340_v42, %v3338_v41  ;;  %v4152_v36 = vld [vmem:[#allocation19_spill] sm:$0xff] }
 0x107   : > { %2588 = vmatprep.subr.bf16.mxu1 %v4133_v19  ;;  %2729 = vmatprep.subr.bf16.mxu0 %v4133_v19 }
 0x109   : > { %2188 = vmatmul.mubr.msk.f32.vlgmr.msra.gmra.mrb[0].mxu1 %vm409_vm1, %v3120_v62 }
 0x10a   : > { %2590 = vmatpush3.bf16.msra.mxu1 %v2589_v4  ;;  %2731 = vmatpush3.bf16.msra.mxu0 %v3614_v51  ;;  %v4147_v4 = vpack.c.bf16 %v3406_v58, %v3401_v48  ;;  %v4153_v51 = vld [vmem:[#allocation20_spill] sm:$0xff] }
 0x10b   : > { %2591 = vmatprep.subr.bf16.mxu1 %v4133_v19  ;;  %2732 = vmatprep.subr.bf16.mxu0 %v4133_v19 }
 0x10c   : > { %2222 = vmatprep.mubr.msk.f32.mxu1 %vm3118_vm0, %v4135_v38 }
 0x10d   : > { %2398 = vmatmul.mubr.msk.f32.vlgmr.msra.gmra.mrb[0].mxu0 %vm387_vm2, %v3120_v62 }
 0x10e   : > { %2593 = vmatpush3.bf16.msra.mxu1 %v4136_v40  ;;  %2734 = vmatpush3.bf16.msra.mxu0 %v4137_v2  ;;  %v4156_v40 = vld [vmem:[#allocation23_spill] sm:$0xff]  ;;  %v4157_v2 = vld [vmem:[#allocation24_spill] sm:$0xff] }
 0x10f   : > { %2594 = vmatprep.subr.bf16.mxu1 %v4133_v19  ;;  %2735 = vmatprep.subr.bf16.mxu0 %v4133_v19 }
 0x110   : > { %2432 = vmatprep.mubr.msk.f32.mxu0 %vm3118_vm0, %v4135_v38 }
 0x112   : > { %2596 = vmatpush3.bf16.msra.mxu1 %v4138_v8  ;;  %2737 = vmatpush3.bf16.msra.mxu0 %v4139_v57  ;;  %v4158_v8 = vld [vmem:[#allocation25_spill] sm:$0xff]  ;;  %v4159_v57 = vld [vmem:[#allocation26_spill] sm:$0xff] }
 0x113   : > { %2597 = vmatprep.subr.bf16.mxu1 %v4133_v19  ;;  %2738 = vmatprep.subr.bf16.mxu0 %v4133_v19 }
 0x116   : > { %2599 = vmatpush3.bf16.msra.mxu1 %v4140_v60  ;;  %2740 = vmatpush3.bf16.msra.mxu0 %v4141_v50  ;;  %v4160_v60 = vld [vmem:[#allocation27_spill] sm:$0xff]  ;;  %v4161_v50 = vld [vmem:[#allocation28_spill] sm:$0xff] }
 0x117   : > { %2600 = vmatprep.subr.bf16.mxu1 %v4133_v19  ;;  %2741 = vmatprep.subr.bf16.mxu0 %v4133_v19 }
 0x11a   : > { %2602 = vmatpush3.bf16.msra.mxu1 %v4142_v54  ;;  %2743 = vmatpush3.bf16.msra.mxu0 %v4143_v53  ;;  %v4162_v54 = vld [vmem:[#allocation29_spill] sm:$0xff]  ;;  %v4163_v53 = vld [vmem:[#allocation30_spill] sm:$0xff] }
 0x11b   : > { %2603 = vmatprep.subr.bf16.mxu1 %v4133_v19  ;;  %2744 = vmatprep.subr.bf16.mxu0 %v4133_v19 }
 0x11e   : > { %2605 = vmatpush3.bf16.msra.mxu1 %v4144_v3  ;;  %2746 = vmatpush3.bf16.msra.mxu0 %v4145_v30  ;;  %v4164_v3 = vand.u32 4294901760, %v3318_v16  ;;  %v4165_v30 = vand.u32 4294901760, %v3320_v17  ;;  %v4169_v16 = vand.u32 4294901760, %v3332_v34  ;;  %v4170_v17 = vand.u32 4294901760, %v3334_v35 }
 0x11f   : > { %2606 = vmatprep.subr.bf16.mxu1 %v4133_v19  ;;  %2747 = vmatprep.subr.bf16.mxu0 %v4133_v19  ;;  %v4173_v35 = vand.u32 4294901760, %v3345_v46  ;;  %v4178_v46 = vand.u32 4294901760, %v3362_v0  ;;  %v4184_v0 = vand.u32 4294901760, %v3384_v28  ;;  %v4190_v28 = vand.u32 4294901760, %v3406_v58 }
 0x120   : > { %v4196_v58 = vand.u32 4294901760, %v3445_v52 }
 0x122   : > { %2608 = vmatpush3.bf16.msra.mxu1 %v4146_v24  ;;  %2749 = vmatpush3.bf16.msra.mxu0 %v4147_v4  ;;  %v2637_v24 = vpack.c.bf16 %v4165_v30, %v4164_v3  ;;  %v4166_v4 = vld [vmem:[#allocation31_spill] sm:$0xff]  ;;  %v2781_v3 = vpack.c.bf16 %v4170_v17, %v4169_v16  ;;  %v4179_v30 = vand.u32 4294901760, %v3367_v6  ;;  %v4185_v6 = vand.u32 4294901760, %v3386_v29 }
 0x123   : > { %2609 = vmatprep.subr.bf16.mxu1 %v4133_v19  ;;  %2750 = vmatprep.subr.bf16.mxu0 %v4133_v19  ;;  %v4191_v29 = vand.u32 4294901760, %v3408_v59 }
 0x126   : > { %2611 = vmatpush3.bf16.msra.mxu1 %v4148_v61  ;;  %2752 = vmatpush3.bf16.msra.mxu0 %v4149_v21  ;;  %v4167_v61 = vand.u32 4294901760, %v3322_v18  ;;  %v4168_v21 = vand.u32 4294901760, %v3326_v23  ;;  %v4171_v18 = vand.u32 4294901760, %v3338_v41  ;;  %v4172_v23 = vand.u32 4294901760, %v3340_v42 }
 0x127   : > { %2612 = vmatprep.subr.bf16.mxu1 %v4133_v19  ;;  %2753 = vmatprep.subr.bf16.mxu0 %v4133_v19  ;;  %v4176_v41 = vand.u32 4294901760, %v3356_v56  ;;  %v4182_v56 = vand.u32 4294901760, %v3377_v10  ;;  %v4188_v10 = vand.u32 4294901760, %v3399_v44  ;;  %v4194_v44 = vand.u32 4294901760, %v3426_v13 }
 0x128   : > { %v2643_v34 = vpack.c.bf16 %v4172_v23, %v4171_v18 }
 0x129   : > { %2223 = vmatmul.mubr.f32.vlgmr.msra.gmra.mrb[0].mxu1 %v3648_v20  ;;  %v4174_v20 = vand.u32 4294901760, %v3347_v47 }
 0x12a   : > { %2614 = vmatpush3.bf16.msra.mxu1 %v3316_v15  ;;  %2755 = vmatpush3.bf16.msra.mxu0 %v4150_v1  ;;  %v2640_v1 = vpack.c.bf16 %v4168_v21, %v4167_v61 }
 0x12b   : > { %2615 = vmatprep.subr.bf16.mxu1 %v4133_v19  ;;  %2756 = vmatprep.subr.bf16.mxu0 %v4133_v19 }
 0x12c   : > { %2257 = vmatprep.mubr.msk.f32.mxu1 %vm3118_vm0, %v4135_v38 }
 0x12d   : > { %2433 = vmatmul.mubr.f32.vlgmr.msra.gmra.mrb[0].mxu0 %v3659_v55  ;;  %v4177_v55 = vand.u32 4294901760, %v3360_v63  ;;  %v4183_v63 = vand.u32 4294901760, %v3382_v27  ;;  %v4189_v27 = vand.u32 4294901760, %v3401_v48  ;;  %v4195_v48 = vand.u32 4294901760, %v3439_v45 }
 0x12e   : > { %2617 = vmatpush3.bf16.msra.mxu1 %v3324_v22  ;;  %2758 = vmatpush3.bf16.msra.mxu0 %v4151_v25 }
 0x12f   : > { %2618 = vmatprep.subr.bf16.mxu1 %v4133_v19  ;;  %2759 = vmatprep.subr.bf16.mxu0 %v4133_v19  ;;  %v2787_v47 = vpack.c.bf16 %v4178_v46, %v4177_v55 }
 0x130   : > { %2467 = vmatprep.mubr.msk.f32.mxu0 %vm3118_vm0, %v4135_v38 }
 0x132   : > { %2620 = vmatpush3.bf16.msra.mxu1 %v4152_v36  ;;  %2761 = vmatpush3.bf16.msra.mxu0 %v4153_v51 }
 0x133   : > { %2621 = vmatprep.subr.bf16.mxu1 %v4133_v19  ;;  %2762 = vmatprep.subr.bf16.mxu0 %v4133_v19 }
 0x136   : > { %2623 = vmatpush3.bf16.msra.mxu1 %v4154_v31  ;;  %2764 = vmatpush3.bf16.msra.mxu0 %v4155_v11 }
 0x137   : > { %2624 = vmatprep.subr.bf16.mxu1 %v4133_v19  ;;  %2765 = vmatprep.subr.bf16.mxu0 %v4133_v19 }
 0x13a   : > { %2626 = vmatpush3.bf16.msra.mxu1 %v4156_v40  ;;  %2767 = vmatpush3.bf16.msra.mxu0 %v4157_v2 }
 0x13b   : > { %2627 = vmatprep.subr.bf16.mxu1 %v4133_v19  ;;  %2768 = vmatprep.subr.bf16.mxu0 %v4133_v19 }
 0x13e   : > { %2629 = vmatpush3.bf16.msra.mxu1 %v4158_v8  ;;  %2770 = vmatpush3.bf16.msra.mxu0 %v4159_v57 }
 0x13f   : > { %2630 = vmatprep.subr.bf16.mxu1 %v4133_v19  ;;  %2771 = vmatprep.subr.bf16.mxu0 %v4133_v19 }
 0x142   : > { %2632 = vmatpush3.bf16.msra.mxu1 %v4160_v60  ;;  %2773 = vmatpush3.bf16.msra.mxu0 %v4161_v50 }
 0x143   : > { %2633 = vmatprep.subr.bf16.mxu1 %v4133_v19  ;;  %2774 = vmatprep.subr.bf16.mxu0 %v4133_v19 }
 0x146   : > { %2635 = vmatpush3.bf16.msra.mxu1 %v4162_v54  ;;  %2776 = vmatpush3.bf16.msra.mxu0 %v4163_v53 }
 0x147   : > { %2636 = vmatprep.subr.bf16.mxu1 %v4133_v19  ;;  %2777 = vmatprep.subr.bf16.mxu0 %v4133_v19 }
 0x149   : > { %2258 = vmatmul.mubr.f32.vlgmr.msra.gmra.mrb[0].mxu1 %v511_v32  ;;  %v2784_v32 = vpack.c.bf16 %v4174_v20, %v4173_v35 }
 0x14a   : > { %2638 = vmatpush3.bf16.msra.mxu1 %v2637_v24  ;;  %2779 = vmatpush3.bf16.msra.mxu0 %v4166_v4  ;;  %v4180_v24 = vand.u32 4294901760, %v3369_v7  ;;  %v4186_v7 = vand.u32 4294901760, %v3391_v37  ;;  %v4192_v37 = vand.u32 4294901760, %v3418_v5 }
 0x14b   : > { %2639 = vmatprep.subr.bf16.mxu1 %v4133_v19  ;;  %2780 = vmatprep.subr.bf16.mxu0 %v4133_v19 }
 0x14c   : > { %2292 = vmatprep.mubr.msk.f32.mxu1 %vm3118_vm0, %v4135_v38  ;;  %v2649_v61 = vpack.c.bf16 %v4180_v24, %v4179_v30  ;;  %v2793_v16 = vpack.c.bf16 %v4186_v7, %v4185_v6  ;;  %v2658_v18 = vpack.c.bf16 %v4192_v37, %v4191_v29 }
 0x14d   : > { %2468 = vmatmul.mubr.f32.vlgmr.msra.gmra.mrb[0].mxu0 %v1153_v43  ;;  %v4175_v43 = vand.u32 4294901760, %v3349_v49  ;;  %v4181_v49 = vand.u32 4294901760, %v3373_v9  ;;  %v4187_v9 = vand.u32 4294901760, %v3395_v39  ;;  %v4193_v39 = vand.u32 4294901760, %v3422_v12 }
 0x14e   : > { %2641 = vmatpush3.bf16.msra.mxu1 %v2640_v1  ;;  %2782 = vmatpush3.bf16.msra.mxu0 %v2781_v3  ;;  %v2652_v1 = vpack.c.bf16 %v4184_v0, %v4183_v63  ;;  %v2796_v3 = vpack.c.bf16 %v4190_v28, %v4189_v27 }
 0x14f   : > { %2642 = vmatprep.subr.bf16.mxu1 %v4133_v19  ;;  %2783 = vmatprep.subr.bf16.mxu0 %v4133_v19  ;;  %v2646_v42 = vpack.c.bf16 %v4176_v41, %v4175_v43  ;;  %v2790_v21 = vpack.c.bf16 %v4182_v56, %v4181_v49  ;;  %v2655_v17 = vpack.c.bf16 %v4188_v10, %v4187_v9 }
 0x150   : > { %2502 = vmatprep.mubr.msk.f32.mxu0 %vm3118_vm0, %v4135_v38  ;;  %v2799_v23 = vpack.c.bf16 %v4194_v44, %v4193_v39 }
 0x152   : > { %2644 = vmatpush3.bf16.msra.mxu1 %v2643_v34  ;;  %2785 = vmatpush3.bf16.msra.mxu0 %v2784_v32  ;;  %v2802_v34 = vpack.c.bf16 %v4196_v58, %v4195_v48 }
 0x153   : > { %2645 = vmatprep.subr.bf16.mxu1 %v4133_v19  ;;  %2786 = vmatprep.subr.bf16.mxu0 %v4133_v19 }
 0x156   : > { %2647 = vmatpush3.bf16.msra.mxu1 %v2646_v42  ;;  %2788 = vmatpush3.bf16.msra.mxu0 %v2787_v47 }
 0x157   : > { %2648 = vmatprep.subr.bf16.mxu1 %v4133_v19  ;;  %2789 = vmatprep.subr.bf16.mxu0 %v4133_v19 }
 0x15a   : > { %2650 = vmatpush3.bf16.msra.mxu1 %v2649_v61  ;;  %2791 = vmatpush3.bf16.msra.mxu0 %v2790_v21 }
 0x15b   : > { %2651 = vmatprep.subr.bf16.mxu1 %v4133_v19  ;;  %2792 = vmatprep.subr.bf16.mxu0 %v4133_v19 }
 0x15e   : > { %2653 = vmatpush3.bf16.msra.mxu1 %v2652_v1  ;;  %2794 = vmatpush3.bf16.msra.mxu0 %v2793_v16 }
 0x15f   : > { %2654 = vmatprep.subr.bf16.mxu1 %v4133_v19  ;;  %2795 = vmatprep.subr.bf16.mxu0 %v4133_v19 }
 0x162   : > { %2656 = vmatpush3.bf16.msra.mxu1 %v2655_v17  ;;  %2797 = vmatpush3.bf16.msra.mxu0 %v2796_v3 }
 0x163   : > { %2657 = vmatprep.subr.bf16.mxu1 %v4133_v19  ;;  %2798 = vmatprep.subr.bf16.mxu0 %v4133_v19 }
 0x166   : > { %2659 = vmatpush3.bf16.msra.mxu1 %v2658_v18  ;;  %2800 = vmatpush3.bf16.msra.mxu0 %v2799_v23 }
 0x167   : > { %2660 = vmatprep.subr.bf16.mxu1 %v4133_v19  ;;  %2801 = vmatprep.subr.bf16.mxu0 %v4133_v19 }
 0x169   : > { %2293 = vmatmul.mubr.msk.f32.vlgmr.msra.gmra.mrb[0].mxu1 %vm409_vm1, %v3120_v62 }
 0x16a   : > { %2662 = vmatpush3.bf16.msra.mxu1 %v3316_v15  ;;  %2803 = vmatpush3.bf16.msra.mxu0 %v2802_v34 }
 0x16b   : > { %2663 = vmatprep.subr.bf16.mxu1 %v4133_v19  ;;  %2804 = vmatprep.subr.bf16.mxu0 %v4133_v19 }
 0x16c   : > { %2327 = vmatprep.mubr.msk.f32.mxu1 %vm3118_vm0, %v4135_v38 }
 0x16d   : > { %2503 = vmatmul.mubr.msk.f32.vlgmr.msra.gmra.mrb[0].mxu0 %vm387_vm2, %v3120_v62 }
 0x16e   : > { %2665 = vmatpush3.bf16.msra.mxu1 %v3324_v22  ;;  %2806 = vmatpush3.bf16.msra.mxu0 %v4151_v25  ;;  %v1069_v22 = vld [vmem:[%s379_s23] sm:$0xff]  ;;  %s3014_s23 = scalar_lea.vmem %s3013_s11, 256 }
 0x16f   : > { %2666 = vmatprep.subr.bf16.mxu1 %v4133_v19  ;;  %2807 = vmatprep.subr.bf16.mxu0 %v4133_v19  ;;  %p3016_p6 = scmp.lt.s32.totalorder %s3014_s23, %s3008_s13 }
 0x170   : > { %2537 = vmatprep.mubr.msk.f32.mxu0 %vm3118_vm0, %v4135_v38 }
 0x171   : > { %p3017_p7 = por %p3016_p6, %p3015_p5 }
 0x172   : > { %2668 = vmatpush3.bf16.msra.mxu1 %v4152_v36  ;;  %2809 = vmatpush3.bf16.msra.mxu0 %v4153_v51  ;;  %v1909_v36 = vld [vmem:[%s4029_s5] ss:$0 sm:$0xff] }
 0x173   : > { %2669 = vmatprep.subr.bf16.mxu1 %v4133_v19  ;;  %2810 = vmatprep.subr.bf16.mxu0 %v4133_v19  ;;  %p3018_p9 = pnand %p3017_p7, %p3011_p4 }
 0x176   : > { %2671 = vmatpush3.bf16.msra.mxu1 %v4154_v31  ;;  %2812 = vmatpush3.bf16.msra.mxu0 %v4155_v11  ;;  %v1910_v31 = vld [vmem:[%s4030_s6] ss:$0 sm:$0xff] }
 0x177   : > { %2672 = vmatprep.subr.bf16.mxu1 %v4133_v19  ;;  %2813 = vmatprep.subr.bf16.mxu0 %v4133_v19 }
 0x17a   : > { %2674 = vmatpush3.bf16.msra.mxu1 %v4156_v40  ;;  %2815 = vmatpush3.bf16.msra.mxu0 %v4157_v2 }
 0x17b   : > { %2675 = vmatprep.subr.bf16.mxu1 %v4133_v19  ;;  %2816 = vmatprep.subr.bf16.mxu0 %v4133_v19 }
 0x17e   : > { %2677 = vmatpush3.bf16.msra.mxu1 %v4158_v8  ;;  %2818 = vmatpush3.bf16.msra.mxu0 %v4159_v57 }
 0x17f   : > { %2678 = vmatprep.subr.bf16.mxu1 %v4133_v19  ;;  %2819 = vmatprep.subr.bf16.mxu0 %v4133_v19 }
 0x182   : > { %2680 = vmatpush3.bf16.msra.mxu1 %v4160_v60  ;;  %2821 = vmatpush3.bf16.msra.mxu0 %v4161_v50 }
 0x183   : > { %2681 = vmatprep.subr.bf16.mxu1 %v4133_v19  ;;  %2822 = vmatprep.subr.bf16.mxu0 %v4133_v19 }
 0x186   : > { %2683 = vmatpush3.bf16.msra.mxu1 %v4162_v54  ;;  %2824 = vmatpush3.bf16.msra.mxu0 %v4163_v53 }
 0x187   : > { %2825 = vmatprep.subr.bf16.mxu0 %v4133_v19 }
 0x189   : > { %2328 = vmatmul.mubr.msk.f32.vlgmr.msra.gmra.mrb[0].mxu1 %vm409_vm1, %v3120_v62 }
 0x18a   : > { %2827 = vmatpush3.bf16.msra.mxu0 %v4166_v4 }
 0x18d   : > { %2538 = vmatmul.mubr.msk.f32.vlgmr.msra.gmra.mrb[0].mxu0 %vm387_vm2, %v3120_v62 }
 0x25c   : > { %v1065_v15 = vpop.f32.mrb[0].mxu1 }
 0x25d   : > { %v2329_v59 = vpop.f32.mrb[1].mxu1  ;;  %v2828_v5 = vadd.f32 %v1069_v22, %v1065_v15 }
 0x260   : > { %v1707_v12 = vpop.f32.mrb[0].mxu0 }
 0x261   : > { %v2829_v13 = vadd.f32 %v2828_v5, %v1707_v12  ;;  %v2539_v45 = vpop.f32.mrb[1].mxu0 }
 0x263   : > { %1712 = vadd.xlane.f32.xlu1 %v2829_v13 }
 0x2f0   : > { %v1713_v52 = vpop.xlane.xlu1 %1712 }
 0x2f1   : > { %v1714_v19 = vmul.f32 0.0078125, %v1713_v52 }
 0x2f3   : > { %v1715_v14 = vsub.f32 %v2829_v13, %v1714_v19 }
 0x2f5   : > { %v1716_v33 = vmul.f32 %v1715_v14, %v1715_v14 }
 0x2f7   : > { %1717 = vadd.xlane.f32.xlu1 %v1716_v33 }
 0x384   : > { %v1718_v26 = vpop.xlane.xlu1 %1717 }
 0x385   : > { %v1719_v38 = vmul.f32 0.0078125, %v1718_v26 }
 0x387   : > { %v1721_v62 = vadd.f32 1e-12, %v1719_v38 }
 0x389   : > { %2950 = vrsqrt.f32 %v1721_v62 }
 0x393   : > { %v2951_v25 = vpop.eup %2950 }
 0x394   : > { %v1723_v51 = vmul.f32 %v2951_v25, %v1715_v14 }
 0x396   : > { %v1730_v11 = vmul.f32 %v1909_v36, %v1723_v51 }
 0x398   : > { %v1738_v40 = vadd.f32 %v1910_v31, %v1730_v11 }
 0x39a   : > { %1739 = vst [vmem:[%s359_s14] sm:$0xff] %v1738_v40 }
 0x39b   : > { %3021 = shalt.err (!%p3018_p9)
}
 0x39c   : > { %s3022_s30 = scalar_lea.hbm %s3971_s27, 128  ;;  %s3026_s29 = scalar_lea.hbm %s4031_s7, 512 }
 0x39d   : > { %p3023_p11 = scmp.ne.s32.totalorder %s3971_s27, %s3022_s30  ;;  %p3027_p8 = scmp.lt.u32.totalorder %s3971_s27, %s4031_s7 }
 0x39e   : > { %p3028_p0 = scmp.lt.u32.totalorder %s3026_s29, %s3022_s30  ;;  %p3030_p10 = scmp.lt.u32.totalorder %s3022_s30, %s3971_s27 }
 0x39f   : > { %p3024_p13 = pnand %p3023_p11, %p4197_p12 }
 0x3a0   : > { %p3029_p2 = por %p3028_p0, %p3027_p8 }
 0x3a1   : > { %p3025_p3 = pneg %p3024_p13 }
 0x3a2   : > { %p3031_p1 = por %p3030_p10, %p3029_p2 }
 0x3a4   : > { %p3032_p4 = pnand %p3031_p1, %p3025_p3 }
 0x3a6   : > { %3035 = shalt.err (!%p3032_p4)
}
 0x3a7   : > { %2858 = dma.vmem_to_hbm [thread:$0]  (%p4197_p12), %s3973_s9, 128, %s3971_s27, %s1741_s28  }
 0x3a8 PF: > { %s4198_s20 = sld [smem:[#allocation16_spill]]  ;;  %p2875_p5 = scmp.ge.s32.totalorder %s3110_s8, 2 }
 0x3a9   : > { %s1768_s10 = sand.u32 1, %s3082_s24  }
 0x3aa   : > { %s1769_s12 = scalar_lea.sflag [#allocation4], %s1768_s10 }
 0x3ae   : > { %p4199_p6 = scmp.ne.s32.totalorder %s4198_s20, 0 }
 0x3b0   : > { %p2868_p7 = pnand %p2875_p5, %p4199_p6 }
 0x3b2   : > { %3077 = dma.done.wait (!%p2868_p7), %s1769_s12, 128  }
 0x3b3   : > { %3079 = vsyncadd (!%p2868_p7), %s1769_s12, 4294967168  ;;  %s22_s8 = sadd.s32 1, %s3110_s8   ;;  %s4200_s14 = sld [smem:[#allocation11_spill]] }
 0x3b4   : > { %p19_p9 = scmp.ge.s32.totalorder %s22_s8, 6   ;;  %s4201_s26 = sld [smem:[#allocation17_spill]] }
 0x3b5   : > { %s4202_s27 = sld [smem:[#allocation12_spill]]  ;;  %s4203_s28 = sld [smem:[#allocation13_spill]] }
 0x3b6   : > { %s4204_s29 = sld [smem:[#allocation14_spill]]  ;;  %s4205_s30 = sld [smem:[#allocation15_spill]] }
 0x3b7   : > { %s4206_s24 = smov %s3086_s25  ;;  %21 = sbr.rel (!%p19_p9) target bundleno = 7 (0x7), region = 98 }
 0x3b9   : > { %s4207_s25 = smov %s4200_s14 }
 0x3be   :  { %1774 = vsyncpa [#allocation3], 1 }
 0x3bf   :  { %1776 = vsyncpa [#allocation3 + $0x1], 1 }
 0x3c0   :  { %1777 = vsyncpa [#allocation6], 1 }
 0x3c1   :  { %1778 = vsyncpa [#allocation4], 1 }
 0x3c2   :  { %1780 = vsyncpa [#allocation4 + $0x1], 1 }

</bundles_post_ra>
